<compile_context>
chip_gen: v7x
topology: tpu7x:2x2x1
jax: 0.10.0
libtpu: 0.0.40
codegen_flags: <defaults>
</compile_context>

<pallas_src>
import functools
import itertools
import random

import jax
import jax.numpy as jnp
from jax.experimental import pallas as pl
from jax.experimental.pallas import tpu as pltpu


# ---------------------------------------------------------------------------
# Batcher merge-exchange sorting network (Knuth 5.2.2, Algorithm M).
# Works for arbitrary n; ~n*log^2(n)/4 comparators.  Self-checked once per n.
# ---------------------------------------------------------------------------
@functools.lru_cache(maxsize=None)
def _batcher_comparators(n):
    pairs = []
    if n >= 2:
        t = 1
        while (1 << t) < n:
            t += 1
        p = 1 << (t - 1)
        while p > 0:
            q = 1 << (t - 1)
            r = 0
            dstep = p
            while True:
                for i in range(n - dstep):
                    if (i & p) == r:
                        pairs.append((i, i + dstep))
                if q == p:
                    break
                dstep = q - p
                q >>= 1
                r = p
            p >>= 1

    # Cheap one-time validation of the generated network.
    def _apply(seq):
        seq = list(seq)
        for a, b in pairs:
            if seq[a] > seq[b]:
                seq[a], seq[b] = seq[b], seq[a]
        return seq

    if n <= 10:  # exhaustive 0-1 principle check
        for bits in itertools.product((0, 1), repeat=n):
            assert _apply(bits) == sorted(bits), ("bad sorting network", n)
    else:  # spot checks for larger n
        rng = random.Random(0)
        for _ in range(16):
            perm = list(range(n))
            rng.shuffle(perm)
            assert _apply(perm) == sorted(perm), ("bad sorting network", n)
    return tuple(pairs)


# ---------------------------------------------------------------------------
# Kernel body.
#   x_ref: (n, d_tile, c_tile)   set dim leading; (d_tile, c_tile) lane-dense
#   w_ref: (d_tile, n)
#   o_ref: (d_tile, c_tile)
# ---------------------------------------------------------------------------
def fspool_kernel(x_ref, w_ref, o_ref, *, compute_dtype):
    n, d, tc = x_ref.shape
    w = w_ref[...].astype(jnp.float32)                     # tiny, resident

    # Each row is a contiguous lane-dense (d_tile, c_tile) slab.
    rows = [x_ref[k].astype(compute_dtype) for k in range(n)]

    # Exact ascending sort of the n rows via min/max comparators (pure VPU,
    # no iota, no selects, no cross-sublane work).
    for a, b in _batcher_comparators(n):
        lo = jnp.minimum(rows[a], rows[b])
        hi = jnp.maximum(rows[a], rows[b])
        rows[a], rows[b] = lo, hi

    # Single weighted accumulation pass in sorted order (matches the reference
    # sum order); f32 accumulator, lane-broadcast of each weight column.
    acc = jnp.zeros((d, tc), dtype=jnp.float32)
    for k in range(n):
        acc = acc + w[:, k:k + 1] * rows[k].astype(jnp.float32)

    o_ref[...] = acc.astype(o_ref.dtype)


# ---------------------------------------------------------------------------
# Per-generation sizing helpers.
# ---------------------------------------------------------------------------
def _vmem_capacity_bytes():
    try:
        return int(pltpu.get_tpu_info().vmem_capacity_bytes)
    except Exception:
        return 64 * 1024 * 1024        # conservative (v7x-sized)


def _native_bf16_ok():
    # bf16 VPU exists on v6e/v7x; keep the f32 upcast on v5e.
    try:
        kind = jax.devices()[0].device_kind.lower()
        return not ("v5 lite" in kind or "v5e" in kind or "v5litepod" in kind)
    except Exception:
        return False


def _choose_c_tile(C, d_tile, n, x_itemsize, out_itemsize, compute_itemsize,
                   budget_bytes, n_buffers):
    """Largest C tile (full C, or a 128-multiple divisor of C) whose working
    set stays within the per-generation VMEM budget."""
    pad_d = -(-d_tile // 8) * 8
    bytes_per_col = (n_buffers * n * d_tile * x_itemsize      # x block buffers
                     + 2 * d_tile * out_itemsize              # out block buffers
                     + (n + 3) * pad_d * compute_itemsize)    # rows + acc + temps
    cap_cols = max(128, budget_bytes // max(bytes_per_col, 1))
    if C <= cap_cols:
        return C
    tc = (cap_cols // 128) * 128
    while tc >= 128:
        if C % tc == 0:
            return tc
        tc -= 128
    # TODO(synk): pad/mask path for huge C with no 128-multiple divisor.
    return C


def _choose_d_tile(d):
    if d <= 256:
        return d
    for cand in (256, 128, 64, 32, 16, 8):
        if d % cand == 0:
            return cand
    return d


# ---------------------------------------------------------------------------
# Wrapper.
# ---------------------------------------------------------------------------
def fspool(x, weight, *, c_tile=None, d_tile=None, pre_transposed=False,
           vmem_limit_bytes=None):
    """FSPool forward.

    x: (B, d, C, n)  (default PyTorch layout), or (B, n, d, C) if
       pre_transposed=True (preferred: skips the wrapper-side HBM transpose).
    weight: (d, n)
    returns: (B, d, C)
    """
    if pre_transposed:
        B, n, d, C = x.shape
        x_t = x
    else:
        B, d, C, n = x.shape
        x_t = jnp.transpose(x, (0, 3, 1, 2))          # (B, n, d, C)
    assert weight.shape == (d, n), (weight.shape, d, n)

    # --- per-generation VMEM budget -------------------------------------
    cap = _vmem_capacity_bytes()
    if vmem_limit_bytes is None:
        vmem_limit_bytes = min((cap * 3) // 4, 110 * 1024 * 1024)
    budget_bytes = vmem_limit_bytes // 2

    # --- compute dtype ----------------------------------------------------
    if x.dtype == jnp.bfloat16 and _native_bf16_ok():
        compute_dtype = jnp.bfloat16
    else:
        compute_dtype = jnp.float32

    # --- tiling -----------------------------------------------------------
    if d_tile is None:
        d_tile = _choose_d_tile(d)
    assert d_tile == d or (d_tile % 8 == 0 and d % d_tile == 0), (d, d_tile)

    n_buffers = 3 if n <= 4 else 2
    if c_tile is None:
        c_tile = _choose_c_tile(
            C, d_tile, n,
            x_itemsize=jnp.dtype(x.dtype).itemsize,
            out_itemsize=jnp.dtype(x.dtype).itemsize,
            compute_itemsize=jnp.dtype(compute_dtype).itemsize,
            budget_bytes=budget_bytes, n_buffers=n_buffers)
    assert C % c_tile == 0, (C, c_tile)
    assert c_tile == C or c_tile % 128 == 0, (C, c_tile)   # lane-dense stores

    # --- specs ------------------------------------------------------------
    x_block = (None, n, d_tile, c_tile)
    x_imap = lambda b, di, ci: (b, 0, di, ci)
    x_spec = pl.BlockSpec(x_block, x_imap)
    if n <= 4:
        try:  # mem-bound regime: deepen the x pipeline (review item 11)
            x_spec = pl.BlockSpec(x_block, x_imap, pipeline_mode=pl.Buffered(3))
        except TypeError:
            x_spec = pl.BlockSpec(x_block, x_imap)

    w_spec = pl.BlockSpec((d_tile, n), lambda b, di, ci: (di, 0))
    o_spec = pl.BlockSpec((None, d_tile, c_tile), lambda b, di, ci: (b, di, ci))

    kernel = functools.partial(fspool_kernel, compute_dtype=compute_dtype)

    return pl.pallas_call(
        kernel,
        out_shape=jax.ShapeDtypeStruct((B, d, C), x.dtype),
        grid=(B, d // d_tile, C // c_tile),
        in_specs=[x_spec, w_spec],
        out_specs=o_spec,
        compiler_params=pltpu.CompilerParams(
            dimension_semantics=("parallel", "parallel", "parallel"),
            vmem_limit_bytes=int(vmem_limit_bytes),
        ),
    )(x_t, weight)


def fspool_ref(x, weight):
    # Pure-JAX transcription of the PyTorch forward, for verification.
    s = jnp.sort(jnp.transpose(x, (0, 2, 1, 3)), axis=-1)    # (B, C, d, n)
    s = weight * s
    s = jnp.sum(s, axis=-1)                                   # (B, C, d)
    return jnp.transpose(s, (0, 2, 1))                        # (B, d, C)


if __name__ == "__main__":
    key = jax.random.PRNGKey(0)
    kx, kw = jax.random.split(key)

    # Main check: lane-dense C tiling, explicit c_tile -> grid (2, 1, 2).
    B, d, C, n = 2, 4, 256, 8
    x = jax.random.normal(kx, (B, d, C, n), dtype=jnp.float32)
    weight = jax.random.normal(kw, (d, n), dtype=jnp.float32)  # nn.init.normal_
    out = jax.block_until_ready(fspool(x, weight, c_tile=128))
    ref = fspool_ref(x, weight)
    assert out.shape == (B, d, C), out.shape
    assert jnp.allclose(out, ref, atol=1e-5, rtol=1e-5), "mismatch vs reference"

    # Pre-transposed producer layout (review item 3): no wrapper HBM transpose.
    x_pre = jnp.transpose(x, (0, 3, 1, 2))                    # (B, n, d, C)
    out_pre = jax.block_until_ready(
        fspool(x_pre, weight, c_tile=128, pre_transposed=True))
    assert jnp.allclose(out_pre, ref, atol=1e-5, rtol=1e-5), "mismatch (pre-T)"

    # Small C (< 128) full-tile path + odd n (non-power-of-2 Batcher network).
    B2, d2, C2, n2 = 2, 4, 16, 5
    x2 = jax.random.normal(kx, (B2, d2, C2, n2), dtype=jnp.float32)
    w2 = jax.random.normal(kw, (d2, n2), dtype=jnp.float32)
    out2 = jax.block_until_ready(fspool(x2, w2))
    ref2 = fspool_ref(x2, w2)
    assert jnp.allclose(out2, ref2, atol=1e-5, rtol=1e-5), "mismatch (small C)"

    print("KERNEL_OK")
</pallas_src>

<mosaic_0001>
module attributes {stable_mosaic.version = 11 : i64} {
  func.func @fspool_kernel(%arg0: i32, %arg1: i32, %arg2: i32, %arg3: memref<1x8x4x128xf32, #tpu.memory_space<vmem>>, %arg4: memref<4x8xf32, #tpu.memory_space<vmem>>, %arg5: memref<1x4x128xf32, #tpu.memory_space<vmem>>) attributes {dimension_semantics = [#tpu.dimension_semantics<parallel>, #tpu.dimension_semantics<parallel>, #tpu.dimension_semantics<parallel>], iteration_bounds = array<i64: 2, 1, 2>, scalar_prefetch = 0 : i64, scratch_operands = 0 : i64, tpu.core_type = #tpu.core_type<tc>, window_params = [{transform_indices = @transform_0, window_bounds = array<i64: 1, 8, 4, 128>}, {transform_indices = @transform_1, window_bounds = array<i64: 4, 8>}, {transform_indices = @transform_2, window_bounds = array<i64: 1, 4, 128>}]} {
    %c0 = arith.constant 0 : index
    %c0_0 = arith.constant 0 : index
    %0 = vector.load %arg4[%c0, %c0_0] : memref<4x8xf32, #tpu.memory_space<vmem>>, vector<4x8xf32>
    %c0_1 = arith.constant 0 : index
    %c0_2 = arith.constant 0 : index
    %c0_3 = arith.constant 0 : index
    %c0_4 = arith.constant 0 : index
    %1 = vector.load %arg3[%c0_1, %c0_2, %c0_3, %c0_4] : memref<1x8x4x128xf32, #tpu.memory_space<vmem>>, vector<1x1x4x128xf32>
    %2 = vector.shape_cast %1 : vector<1x1x4x128xf32> to vector<4x128xf32>
    %c0_5 = arith.constant 0 : index
    %c1 = arith.constant 1 : index
    %c0_6 = arith.constant 0 : index
    %c0_7 = arith.constant 0 : index
    %3 = vector.load %arg3[%c0_5, %c1, %c0_6, %c0_7] : memref<1x8x4x128xf32, #tpu.memory_space<vmem>>, vector<1x1x4x128xf32>
    %4 = vector.shape_cast %3 : vector<1x1x4x128xf32> to vector<4x128xf32>
    %c0_8 = arith.constant 0 : index
    %c2 = arith.constant 2 : index
    %c0_9 = arith.constant 0 : index
    %c0_10 = arith.constant 0 : index
    %5 = vector.load %arg3[%c0_8, %c2, %c0_9, %c0_10] : memref<1x8x4x128xf32, #tpu.memory_space<vmem>>, vector<1x1x4x128xf32>
    %6 = vector.shape_cast %5 : vector<1x1x4x128xf32> to vector<4x128xf32>
    %c0_11 = arith.constant 0 : index
    %c3 = arith.constant 3 : index
    %c0_12 = arith.constant 0 : index
    %c0_13 = arith.constant 0 : index
    %7 = vector.load %arg3[%c0_11, %c3, %c0_12, %c0_13] : memref<1x8x4x128xf32, #tpu.memory_space<vmem>>, vector<1x1x4x128xf32>
    %8 = vector.shape_cast %7 : vector<1x1x4x128xf32> to vector<4x128xf32>
    %c0_14 = arith.constant 0 : index
    %c4 = arith.constant 4 : index
    %c0_15 = arith.constant 0 : index
    %c0_16 = arith.constant 0 : index
    %9 = vector.load %arg3[%c0_14, %c4, %c0_15, %c0_16] : memref<1x8x4x128xf32, #tpu.memory_space<vmem>>, vector<1x1x4x128xf32>
    %10 = vector.shape_cast %9 : vector<1x1x4x128xf32> to vector<4x128xf32>
    %c0_17 = arith.constant 0 : index
    %c5 = arith.constant 5 : index
    %c0_18 = arith.constant 0 : index
    %c0_19 = arith.constant 0 : index
    %11 = vector.load %arg3[%c0_17, %c5, %c0_18, %c0_19] : memref<1x8x4x128xf32, #tpu.memory_space<vmem>>, vector<1x1x4x128xf32>
    %12 = vector.shape_cast %11 : vector<1x1x4x128xf32> to vector<4x128xf32>
    %c0_20 = arith.constant 0 : index
    %c6 = arith.constant 6 : index
    %c0_21 = arith.constant 0 : index
    %c0_22 = arith.constant 0 : index
    %13 = vector.load %arg3[%c0_20, %c6, %c0_21, %c0_22] : memref<1x8x4x128xf32, #tpu.memory_space<vmem>>, vector<1x1x4x128xf32>
    %14 = vector.shape_cast %13 : vector<1x1x4x128xf32> to vector<4x128xf32>
    %c0_23 = arith.constant 0 : index
    %c7 = arith.constant 7 : index
    %c0_24 = arith.constant 0 : index
    %c0_25 = arith.constant 0 : index
    %15 = vector.load %arg3[%c0_23, %c7, %c0_24, %c0_25] : memref<1x8x4x128xf32, #tpu.memory_space<vmem>>, vector<1x1x4x128xf32>
    %16 = vector.shape_cast %15 : vector<1x1x4x128xf32> to vector<4x128xf32>
    %17 = arith.minimumf %2, %10 : vector<4x128xf32>
    %18 = arith.maximumf %2, %10 : vector<4x128xf32>
    %19 = arith.minimumf %4, %12 : vector<4x128xf32>
    %20 = arith.maximumf %4, %12 : vector<4x128xf32>
    %21 = arith.minimumf %6, %14 : vector<4x128xf32>
    %22 = arith.maximumf %6, %14 : vector<4x128xf32>
    %23 = arith.minimumf %8, %16 : vector<4x128xf32>
    %24 = arith.maximumf %8, %16 : vector<4x128xf32>
    %25 = arith.minimumf %17, %21 : vector<4x128xf32>
    %26 = arith.maximumf %17, %21 : vector<4x128xf32>
    %27 = arith.minimumf %19, %23 : vector<4x128xf32>
    %28 = arith.maximumf %19, %23 : vector<4x128xf32>
    %29 = arith.minimumf %18, %22 : vector<4x128xf32>
    %30 = arith.maximumf %18, %22 : vector<4x128xf32>
    %31 = arith.minimumf %20, %24 : vector<4x128xf32>
    %32 = arith.maximumf %20, %24 : vector<4x128xf32>
    %33 = arith.minimumf %26, %29 : vector<4x128xf32>
    %34 = arith.maximumf %26, %29 : vector<4x128xf32>
    %35 = arith.minimumf %28, %31 : vector<4x128xf32>
    %36 = arith.maximumf %28, %31 : vector<4x128xf32>
    %37 = arith.minimumf %25, %27 : vector<4x128xf32>
    %38 = arith.maximumf %25, %27 : vector<4x128xf32>
    %39 = arith.minimumf %33, %35 : vector<4x128xf32>
    %40 = arith.maximumf %33, %35 : vector<4x128xf32>
    %41 = arith.minimumf %34, %36 : vector<4x128xf32>
    %42 = arith.maximumf %34, %36 : vector<4x128xf32>
    %43 = arith.minimumf %30, %32 : vector<4x128xf32>
    %44 = arith.maximumf %30, %32 : vector<4x128xf32>
    %45 = arith.minimumf %38, %41 : vector<4x128xf32>
    %46 = arith.maximumf %38, %41 : vector<4x128xf32>
    %47 = arith.minimumf %40, %43 : vector<4x128xf32>
    %48 = arith.maximumf %40, %43 : vector<4x128xf32>
    %49 = arith.minimumf %45, %39 : vector<4x128xf32>
    %50 = arith.maximumf %45, %39 : vector<4x128xf32>
    %51 = arith.minimumf %47, %46 : vector<4x128xf32>
    %52 = arith.maximumf %47, %46 : vector<4x128xf32>
    %53 = arith.minimumf %42, %48 : vector<4x128xf32>
    %54 = arith.maximumf %42, %48 : vector<4x128xf32>
    %cst = arith.constant 0.000000e+00 : f32
    %55 = vector.broadcast %cst : f32 to vector<4x128xf32>
    %56 = vector.extract_strided_slice %0 {offsets = [0, 0], sizes = [4, 1], strides = [1, 1]} : vector<4x8xf32> to vector<4x1xf32>
    %57 = vector.broadcast %56 : vector<4x1xf32> to vector<4x128xf32>
    %58 = arith.mulf %57, %37 : vector<4x128xf32>
    %59 = arith.addf %55, %58 : vector<4x128xf32>
    %60 = vector.extract_strided_slice %0 {offsets = [0, 1], sizes = [4, 1], strides = [1, 1]} : vector<4x8xf32> to vector<4x1xf32>
    %61 = vector.broadcast %60 : vector<4x1xf32> to vector<4x128xf32>
    %62 = arith.mulf %61, %49 : vector<4x128xf32>
    %63 = arith.addf %59, %62 : vector<4x128xf32>
    %64 = vector.extract_strided_slice %0 {offsets = [0, 2], sizes = [4, 1], strides = [1, 1]} : vector<4x8xf32> to vector<4x1xf32>
    %65 = vector.broadcast %64 : vector<4x1xf32> to vector<4x128xf32>
    %66 = arith.mulf %65, %50 : vector<4x128xf32>
    %67 = arith.addf %63, %66 : vector<4x128xf32>
    %68 = vector.extract_strided_slice %0 {offsets = [0, 3], sizes = [4, 1], strides = [1, 1]} : vector<4x8xf32> to vector<4x1xf32>
    %69 = vector.broadcast %68 : vector<4x1xf32> to vector<4x128xf32>
    %70 = arith.mulf %69, %51 : vector<4x128xf32>
    %71 = arith.addf %67, %70 : vector<4x128xf32>
    %72 = vector.extract_strided_slice %0 {offsets = [0, 4], sizes = [4, 1], strides = [1, 1]} : vector<4x8xf32> to vector<4x1xf32>
    %73 = vector.broadcast %72 : vector<4x1xf32> to vector<4x128xf32>
    %74 = arith.mulf %73, %52 : vector<4x128xf32>
    %75 = arith.addf %71, %74 : vector<4x128xf32>
    %76 = vector.extract_strided_slice %0 {offsets = [0, 5], sizes = [4, 1], strides = [1, 1]} : vector<4x8xf32> to vector<4x1xf32>
    %77 = vector.broadcast %76 : vector<4x1xf32> to vector<4x128xf32>
    %78 = arith.mulf %77, %53 : vector<4x128xf32>
    %79 = arith.addf %75, %78 : vector<4x128xf32>
    %80 = vector.extract_strided_slice %0 {offsets = [0, 6], sizes = [4, 1], strides = [1, 1]} : vector<4x8xf32> to vector<4x1xf32>
    %81 = vector.broadcast %80 : vector<4x1xf32> to vector<4x128xf32>
    %82 = arith.mulf %81, %54 : vector<4x128xf32>
    %83 = arith.addf %79, %82 : vector<4x128xf32>
    %84 = vector.extract_strided_slice %0 {offsets = [0, 7], sizes = [4, 1], strides = [1, 1]} : vector<4x8xf32> to vector<4x1xf32>
    %85 = vector.broadcast %84 : vector<4x1xf32> to vector<4x128xf32>
    %86 = arith.mulf %85, %44 : vector<4x128xf32>
    %87 = arith.addf %83, %86 : vector<4x128xf32>
    %c0_26 = arith.constant 0 : index
    %c0_27 = arith.constant 0 : index
    %c0_28 = arith.constant 0 : index
    %88 = vector.load %arg5[%c0_26, %c0_27, %c0_28] : memref<1x4x128xf32, #tpu.memory_space<vmem>>, vector<1x4x128xf32>
    %89 = vector.shape_cast %88 : vector<1x4x128xf32> to vector<4x128xf32>
    %90 = vector.shape_cast %87 : vector<4x128xf32> to vector<1x4x128xf32>
    tpu.vector_store %arg5[%c0_26, %c0_27, %c0_28], %90 {strides = array<i32>} : memref<1x4x128xf32, #tpu.memory_space<vmem>>, vector<1x4x128xf32>,
    return
  }
  func.func @transform_0(%arg0: i32, %arg1: i32, %arg2: i32) -> (i32, i32, i32, i32) {
    %c0_i32 = arith.constant 0 : i32
    %c0_i32_0 = arith.constant 0 : i32
    return %arg0, %c0_i32, %arg1, %arg2 : i32, i32, i32, i32
  }
  func.func @transform_1(%arg0: i32, %arg1: i32, %arg2: i32) -> (i32, i32) {
    %c0_i32 = arith.constant 0 : i32
    %c0_i32_0 = arith.constant 0 : i32
    return %arg1, %c0_i32 : i32, i32
  }
  func.func @transform_2(%arg0: i32, %arg1: i32, %arg2: i32) -> (i32, i32, i32) {
    %c0_i32 = arith.constant 0 : i32
    return %arg0, %arg1, %arg2 : i32, i32, i32
  }
}

</mosaic_0001>

<bundles_post_ra>
// kernel: tpu_custom_call.1
= control target key start
LH: loop header
LB: loop body
LE: loop exit
PB: predicated region body
PF: predicated region fallthrough
CT: control target
= control target key end

     0   :  { %s1008_s0 = inlined_call_operand.hbm [shape: f32[2,8,4,256], index: 0, kind: input, shape index: {}]   ;;  %s1009_s1 = inlined_call_operand.hbm [shape: f32[4,8], index: 1, kind: input, shape index: {}]   ;;  %s1010_s2 = inlined_call_operand.hbm [shape: f32[2,4,256], index: 2, kind: output, shape index: {}]  }
   0x1   :  { %1018 = sst [smem:[#allocation12_spill]] %s1009_s1 }
   0x2   :  { %7 = vsyncpa [#allocation3], 0 }
   0x3   :  { %9 = vsyncpa [#allocation3 + $0x1], 0 }
   0x4   :  { %10 = vsyncpa [#allocation6], 0 }
   0x5   :  { %11 = vsyncpa [#allocation4], 0 }
   0x6   :  { %13 = vsyncpa [#allocation4 + $0x1], 0  ;;  %s762_s9 = smov 0   ;;  %s764_s10 = smov 0  }
   0x7   :  { %s766_s11 = smov 0   ;;  %s768_s12 = smov 0  }
   0x8   :  { %s770_s13 = smov 0   ;;  %s772_s14 = smov 0  }
   0x9   :  { %s774_s15 = smov 0   ;;  %s776_s16 = smov 0  }
   0xa LB: > { %s438_s17 = sadd.s32 4294967295, %s731_s16   ;;  %s439_s18 = sadd.s32 4294967294, %s731_s16   ;;  %s731_s16 = sphi %s776_s16, %s19_s16   ;;  %s727_s15 = sphi %s774_s15, %s1043_s15   ;;  %s723_s14 = sphi %s772_s14, %s1042_s14   ;;  %s719_s13 = sphi %s770_s13, %s1041_s13   ;;  %s715_s12 = sphi %s768_s12, %s1040_s12   ;;  %s711_s11 = sphi %s766_s11, %s1039_s11   ;;  %s707_s10 = sphi %s764_s10, %s1038_s10   ;;  %s703_s9 = sphi %s762_s9, %s1037_s9  }
   0xb   : > { %p56_p0 = scmp.ne.s32.totalorder %s711_s11, %s707_s10  ;;  %p57_p1 = scmp.eq.s32.totalorder %s731_s16, 0 }
   0xc   : > { %p62_p2 = scmp.ne.s32.totalorder %s707_s10, %s703_s9  ;;  %p810_p3 = scmp.eq.s32.totalorder %s438_s17, 0 }
   0xd   : > { %p116_p4 = scmp.eq.s32.totalorder %s438_s17, 3  ;;  %p814_p5 = por %p57_p1, %p56_p0 }
   0xe   : > { %s1019_s20 = scalar_select %p810_p3, 1, 0 }
   0xf   : > { %p122_p6 = scmp.eq.s32.totalorder %s439_s18, 3  ;;  %p820_p7 = por %p810_p3, %p62_p2 }
  0x10   : > { %p824_p8 = por %p116_p4, %p56_p0  ;;  %p440_p10 = scmp.ge.s32.totalorder %s731_s16, 1 }
  0x11   : > { %s1021_s22 = scalar_select %p820_p7, 1, 0 }
  0x12   : > { %s1022_s23 = scalar_select %p824_p8, 1, 0 }
  0x13   : > { %p828_p9 = por %p122_p6, %p62_p2  ;;  %p129_p11 = scmp.lt.s32.totalorder %s731_s16, 5 }
  0x14   : > { %s733_s26 = smov [#allocation5]   ;;  %p483_p13 = scmp.lt.s32.totalorder %s731_s16, 4 }
  0x15   : > { %s1023_s24 = scalar_select %p828_p9, 1, 0 }
  0x16   : > { %p834_p12 = pnand %p440_p10, %p129_p11  ;;  %s144_s27 = sshll.u32 %s733_s26, 4  ;;  %s145_s27 = int_to_ptr.vmem [resolvable:$true] %s144_s27 }
  0x17   : > { %p843_p1 = pnand %p483_p13, %p814_p5  ;;  %s31_s30 = sadd.s32 1, %s723_s14 }
  0x18   : > { %s1024_s25 = scalar_select %p834_p12, 1, 0 }
  0x19   : > { %p470_p0 = pneg %p834_p12  ;;  %s1027_s1 = sld [smem:[#allocation12_spill]] }
  0x1a   : > { %s1025_s28 = scalar_select %p843_p1, 1, 0 }
  0x1b   : > { %p849_p2 = pnand %p470_p0, %p810_p3 }
  0x1d   : > { %p573_p5 = pneg %p849_p2 }
  0x1f   : > { %s571_s5 = scalar_lea.hbm %s1027_s1, 64 }
  0x20   : > { %p572_p4 = scmp.ne.s32.totalorder %s1027_s1, %s571_s5  ;;  %p578_p11 = scmp.lt.u32.totalorder %s571_s5, %s1027_s1 }
  0x22   : > { %p574_p6 = pnand %p573_p5, %p572_p4 }
  0x24   : > { %p575_p10 = pneg %p574_p6 }
  0x26   : > { %p580_p13 = pnand %p578_p11, %p575_p10 }
  0x28   : > { %583 = shalt.err (!%p580_p13)
}
  0x29   : > { %s584_s18 = scalar_lea.vmem %s145_s27, 64  ;;  %p592_p3 = scmp.lt.s32.totalorder %s145_s27, %s145_s27 }
  0x2a   : > { %p585_p0 = scmp.ne.s32.totalorder %s145_s27, %s584_s18  ;;  %p593_p7 = scmp.lt.s32.totalorder %s584_s18, %s584_s18 }
  0x2c   : > { %p587_p9 = pnand %p585_p0, %p573_p5  ;;  %p594_p12 = por %p593_p7, %p592_p3 }
  0x2e   : > { %p588_p8 = pneg %p587_p9 }
  0x30   : > { %p595_p1 = pnand %p594_p12, %p588_p8 }
  0x32   : > { %598 = shalt.err (!%p595_p1)
}
  0x33   : > { %473 = dma.hbm_to_vmem [thread:$0]  (!%p849_p2), %s1027_s1, 64, %s145_s27, [#allocation6]  }
  0x34   : > { %p32_p4 = scmp.ge.s32.totalorder %s31_s30, 2  ;;  %s38_s3 = sadd.s32 1, %s727_s15 }
  0x35   : > { %s155_s4 = sand.u32 1, %s711_s11   ;;  %s444_s5 = sshll.u32 %s727_s15, 4 }
  0x36   : > { %s1045_s30 = smov (%p32_p4, %s31_s30), 0  ;;  %s1047_s3 = smov (!%p32_p4, %s38_s3), %s727_s15 }
  0x37   : > { %1028 = sst [smem:[#allocation11_spill]] %s1045_s30  ;;  %s45_s29 = ssub.s32 %s723_s14, %s1045_s30 }
  0x38   : > { %p40_p3 = scmp.ge.s32.totalorder %s1047_s3, 2  ;;  %s443_s6 = sshll.u32 %s155_s4, 5 }
  0x39   : > { %s166_s7 = sadd.s32 %s723_s14, %s444_s5  ;;  %s159_s8 = scalar_lea.vmem [#allocation2], %s443_s6 }
  0x3a   : > { %s1049_s3 = smov (%p40_p3, %s1047_s3), 0  ;;  %s445_s27 = sshll.u32 %s166_s7, 6 }
  0x3b   : > { %s169_s17 = sshll.u32 %s159_s8, 4  ;;  %s42_s18 = ssub.s32 %s727_s15, %s1049_s3  ;;  %s888_s17 = int_to_ptr.vmem [resolvable:$true] %s169_s17 }
  0x3c   : > { %s886_s19 = scalar_lea.hbm %s1008_s0, %s445_s27  ;;  %s46_s1 = sor.u32 %s45_s29, %s42_s18 }
  0x3d   : > { %p47_p7 = scmp.eq.s32.totalorder %s46_s1, 0  ;;  %s1029_s5 = sadd.s32 1, %s711_s11 }
  0x3e   : > { %s895_s7 = scalar_lea.sflag [#allocation3], %s155_s4  ;;  %s599_s6 = scalar_lea.hbm %s886_s19, 512 }
  0x3f   : > { %s893_s30 = scalar_select %p47_p7, %s711_s11, %s1029_s5  }
  0x40   : > { %p600_p8 = scmp.ne.s32.totalorder %s886_s19, %s599_s6  ;;  %p1030_p9 = scmp.ne.s32.totalorder %s1025_s28, 0 }
  0x41   : > { %s604_s29 = scalar_lea.hbm %s1008_s0, 2048  ;;  %p605_p5 = scmp.lt.u32.totalorder %s886_s19, %s1008_s0 }
  0x42   : > { %p601_p12 = pneg %p1030_p9  ;;  %p606_p6 = scmp.lt.u32.totalorder %s604_s29, %s599_s6 }
  0x43   : > { %p608_p11 = scmp.lt.u32.totalorder %s599_s6, %s886_s19 }
  0x44   : > { %p602_p1 = pnand %p601_p12, %p600_p8  ;;  %p607_p10 = por %p606_p6, %p605_p5 }
  0x46   : > { %p603_p2 = pneg %p602_p1  ;;  %p609_p13 = por %p608_p11, %p607_p10 }
  0x48   : > { %p610_p0 = pnand %p609_p13, %p603_p2 }
  0x4a   : > { %613 = shalt.err (!%p610_p0)
}
  0x4b   : > { %s614_s1 = scalar_lea.vmem %s888_s17, 512  ;;  %s734_s4 = smov [#allocation2]  }
  0x4c   : > { %p615_p4 = scmp.ne.s32.totalorder %s888_s17, %s614_s1  ;;  %s619_s26 = sshll.u32 %s734_s4, 4  ;;  %s620_s26 = int_to_ptr.vmem [resolvable:$false] %s619_s26 }
  0x4d   : > { %s621_s5 = scalar_lea.vmem %s620_s26, 1024  ;;  %p622_p8 = scmp.lt.s32.totalorder %s888_s17, %s620_s26 }
  0x4e   : > { %p617_p3 = pnand %p615_p4, %p601_p12  ;;  %p623_p1 = scmp.lt.s32.totalorder %s621_s5, %s614_s1 }
  0x50   : > { %p618_p7 = pneg %p617_p3  ;;  %p624_p5 = por %p623_p1, %p622_p8 }
  0x52   : > { %p625_p6 = pnand %p624_p5, %p618_p7 }
  0x54   : > { %628 = shalt.err (!%p625_p6)
}
  0x55   : > { %s735_s6 = smov 128   ;;  %s736_s27 = smov 64  }
  0x56   : > { %s737_s8 = smov 4   ;;  %p1031_p12 = scmp.ne.s32.totalorder %s1024_s25, 0 }
  0x57   : > { %477 = dma.hbm_to_vmem [thread:$0]  (!%p1030_p9), %s886_s19, 512, %s888_s17, %s895_s7, %s735_s6, %s736_s27, %s737_s8  }
  0x58   : > { %181 = sbr.rel (%p1031_p12) target bundleno = 267 (0x10b), region = 28  ;;  %s926_s29 = sand.u32 (!%p1031_p12), 1, %s707_s10  }
  0x59   : > { %s447_s18 = sshll.u32 (!%p1031_p12), %s926_s29, 5  ;;  %s184_s21 = scalar_lea.sflag (!%p1031_p12), [#allocation3], %s926_s29 }
  0x5a   : > { %s930_s1 = scalar_lea.vmem (!%p1031_p12), [#allocation2], %s447_s18  ;;  %p1032_p2 = scmp.ne.s32.totalorder (!%p1031_p12), %s1021_s22, 0 }
  0x5f   : > { %690 = dma.done.wait (%p1032_p2), %s184_s21, 512  }
  0x60   : > { %692 = vsyncadd (%p1032_p2), %s184_s21, 4294966784  ;;  %p1033_p9 = scmp.ne.s32.totalorder %s1019_s20, 0 }
  0x62   : > { %694 = dma.done.wait (%p1033_p9), [#allocation6], 64  }
  0x63   : > { %696 = vsyncadd (%p1033_p9), [#allocation6], 4294967232  ;;  %v738_v0 = vmov 2   ;;  %v739_v1 = vmov 0   ;;  %v212_v2 = vld [vmem:[#allocation5] sm:$0xf] }
  0x64   : > { %564 = vset.pattern.permute.xlu1 %v738_v0  ;;  %562 = vset.pattern.permute.xlu0 %v739_v1  ;;  %v740_v3 = vmov 3   ;;  %v741_v4 = vmov 1   ;;  %v742_v5 = vmov 4   ;;  %v743_v6 = vmov 5   ;;  %v213_v9 = vld [vmem:[%s930_s1] sm:$0xf] }
  0x65   : > { %280 = vperm.xlu1 %564, %v212_v2   ;;  %268 = vperm.xlu0 %562, %v212_v2   ;;  %v744_v7 = vmov 6   ;;  %v745_v8 = vmov 7   ;;  %v450_v10 = vld [vmem:[%s930_s1 + $0x4] sm:$0xf]  ;;  %v451_v11 = vld [vmem:[%s930_s1 + $0x8] sm:$0xf] }
  0x66   : > { %v453_v12 = vld [vmem:[%s930_s1 + $0x10] sm:$0xf]  ;;  %v454_v13 = vld [vmem:[%s930_s1 + $0x14] sm:$0xf]  ;;  %v452_v14 = vld [vmem:[%s930_s1 + $0xc] sm:$0xf] }
  0x67   : > { %v455_v15 = vld [vmem:[%s930_s1 + $0x18] sm:$0xf]  ;;  %v456_v16 = vld [vmem:[%s930_s1 + $0x1c] sm:$0xf]  ;;  %v228_v17 = vmin.f32 %v213_v9, %v453_v12  ;;  %v229_v18 = vmax.f32 %v213_v9, %v453_v12  ;;  %v230_v19 = vmin.f32 %v450_v10, %v454_v13  ;;  %v231_v20 = vmax.f32 %v450_v10, %v454_v13  ;;  %s449_s19 = sshll.u32 %s926_s29, 2  ;;  %s458_s20 = sshll.u32 %s719_s13, 1 }
  0x68   : > { %v232_v21 = vmin.f32 %v451_v11, %v455_v15  ;;  %v233_v22 = vmax.f32 %v451_v11, %v455_v15  ;;  %v234_v23 = vmin.f32 %v452_v14, %v456_v16  ;;  %v235_v24 = vmax.f32 %v452_v14, %v456_v16  ;;  %s330_s22 = sadd.s32 %s715_s12, %s458_s20  ;;  %s211_s28 = scalar_lea.vmem [#allocation7], %s449_s19 }
  0x69   : > { %565 = vset.pattern.permute.xlu1 %v740_v3  ;;  %563 = vset.pattern.permute.xlu0 %v741_v4  ;;  %s459_s25 = sshll.u32 %s330_s22, 6  ;;  %s334_s17 = sshll.u32 %s211_s28, 4  ;;  %s956_s17 = int_to_ptr.vmem [resolvable:$true] %s334_s17 }
  0x6a   : > { %286 = vperm.xlu1 %565, %v212_v2   ;;  %274 = vperm.xlu0 %563, %v212_v2   ;;  %v237_v25 = vmax.f32 %v228_v17, %v232_v21  ;;  %v239_v26 = vmax.f32 %v230_v19, %v234_v23  ;;  %v240_v27 = vmin.f32 %v229_v18, %v233_v22  ;;  %s954_s26 = scalar_lea.hbm %s1010_s2, %s459_s25  ;;  %s317_s13 = scalar_lea.sflag [#allocation4], %s926_s29 }
  0x6b   : > { %v242_v28 = vmin.f32 %v231_v20, %v235_v24  ;;  %v236_v29 = vmin.f32 %v228_v17, %v232_v21  ;;  %v238_v30 = vmin.f32 %v230_v19, %v234_v23  ;;  %v241_v33 = vmax.f32 %v229_v18, %v233_v22  ;;  %s629_s12 = scalar_lea.vmem %s956_s17, 64  ;;  %p1034_p11 = scmp.ne.s32.totalorder %s1022_s23, 0 }
  0x6c   : > { %v245_v31 = vmax.f32 %v237_v25, %v240_v27  ;;  %v243_v34 = vmax.f32 %v231_v20, %v235_v24  ;;  %v244_v35 = vmin.f32 %v237_v25, %v240_v27  ;;  %p630_p10 = scmp.ne.s32.totalorder %s956_s17, %s629_s12  ;;  %s746_s5 = smov [#allocation7]  }
  0x6d   : > { %v247_v32 = vmax.f32 %v239_v26, %v242_v28  ;;  %v246_v36 = vmin.f32 %v239_v26, %v242_v28  ;;  %v249_v37 = vmax.f32 %v236_v29, %v238_v30  ;;  %v248_v45 = vmin.f32 %v236_v29, %v238_v30  ;;  %s633_s6 = sshll.u32 %s746_s5, 4  ;;  %s634_s6 = int_to_ptr.vmem [resolvable:$false] %s633_s6 }
  0x6e   : > { %566 = vset.pattern.permute.xlu1 %v742_v5  ;;  %567 = vset.pattern.permute.xlu0 %v743_v6  ;;  %v254_v40 = vmin.f32 %v241_v33, %v243_v34  ;;  %v255_v9 = vmax.f32 %v241_v33, %v243_v34  ;;  %p631_p13 = pnand %p630_p10, %p1034_p11  ;;  %s635_s27 = scalar_lea.vmem %s634_s6, 128 }
  0x6f   : > { %292 = vperm.xlu1 %566, %v212_v2   ;;  %298 = vperm.xlu0 %567, %v212_v2   ;;  %v252_v38 = vmin.f32 %v245_v31, %v247_v32  ;;  %v251_v39 = vmax.f32 %v244_v35, %v246_v36  ;;  %v250_v41 = vmin.f32 %v244_v35, %v246_v36  ;;  %p636_p4 = scmp.lt.s32.totalorder %s956_s17, %s634_s6  ;;  %p637_p3 = scmp.lt.s32.totalorder %s635_s27, %s629_s12 }
  0x70   : > { %v253_v52 = vmax.f32 %v245_v31, %v247_v32  ;;  %p632_p0 = pneg %p631_p13 }
  0x71   : > { %v256_v42 = vmin.f32 %v249_v37, %v252_v38  ;;  %v257_v46 = vmax.f32 %v249_v37, %v252_v38  ;;  %v258_v47 = vmin.f32 %v251_v39, %v254_v40  ;;  %v259_v53 = vmax.f32 %v251_v39, %v254_v40  ;;  %p638_p7 = por %p637_p3, %p636_p4 }
  0x73   : > { %568 = vset.pattern.permute.xlu1 %v744_v7  ;;  %570 = vset.pattern.permute.xlu0 %v745_v8  ;;  %v260_v48 = vmin.f32 %v256_v42, %v250_v41  ;;  %v261_v49 = vmax.f32 %v256_v42, %v250_v41  ;;  %v262_v55 = vmin.f32 %v258_v47, %v257_v46  ;;  %p639_p8 = pnand %p638_p7, %p632_p0 }
  0x74   : > { %304 = vperm.xlu1 %568, %v212_v2   ;;  %v263_v57 = vmax.f32 %v258_v47, %v257_v46  ;;  %v264_v60 = vmin.f32 %v253_v52, %v259_v53  ;;  %v265_v4 = vmax.f32 %v253_v52, %v259_v53 }
  0x78   : > { %569 = vset.pattern.permute.xlu1 %v745_v8 }
  0x79   : > { %310 = vperm.xlu1 %569, %v212_v2  }
  0xe4   : > { %v281_v43 = vpop.permute.xlu1 %280  ;;  %v269_v44 = vpop.permute.xlu0 %268 }
  0xe5   : > { %v271_v54 = vmul.f32 %v269_v44, %v248_v45  ;;  %v283_v58 = vmul.f32 %v281_v43, %v261_v49 }
  0xe9   : > { %v287_v50 = vpop.permute.xlu1 %286  ;;  %v275_v51 = vpop.permute.xlu0 %274 }
  0xea   : > { %v277_v56 = vmul.f32 %v275_v51, %v260_v48  ;;  %v289_v61 = vmul.f32 %v287_v50, %v262_v55 }
  0xec   : > { %v278_v59 = vadd.f32 %v277_v56, %v271_v54 }
  0xee   : > { %v284_v62 = vadd.f32 %v283_v58, %v278_v59  ;;  %v293_v63 = vpop.permute.xlu1 %292  ;;  %v299_v0 = vpop.permute.xlu0 %298 }
  0xef   : > { %v295_v1 = vmul.f32 %v293_v63, %v263_v57  ;;  %v301_v3 = vmul.f32 %v299_v0, %v264_v60 }
  0xf0   : > { %v290_v2 = vadd.f32 %v289_v61, %v284_v62 }
  0xf2   : > { %v296_v5 = vadd.f32 %v295_v1, %v290_v2 }
  0xf3   : > { %v305_v6 = vpop.permute.xlu1 %304 }
  0xf4   : > { %v302_v7 = vadd.f32 %v301_v3, %v296_v5  ;;  %v307_v8 = vmul.f32 %v305_v6, %v265_v4 }
  0xf6   : > { %v308_v11 = vadd.f32 %v307_v8, %v302_v7 }
  0xf8   : > { %v311_v10 = vpop.permute.xlu1 %310 }
  0xf9   : > { %v313_v12 = vmul.f32 %v311_v10, %v255_v9 }
  0xfb   : > { %v314_v13 = vadd.f32 %v313_v12, %v308_v11 }
  0xfd   : > { %315 = vst [vmem:[%s211_s28] sm:$0xf] %v314_v13 }
  0xfe   : > { %642 = shalt.err (!%p639_p8)
}
  0xff   : > { %s643_s8 = scalar_lea.hbm %s954_s26, 64  ;;  %s647_s21 = scalar_lea.hbm %s1010_s2, 256 }
 0x100   : > { %p644_p1 = scmp.ne.s32.totalorder %s954_s26, %s643_s8  ;;  %p648_p12 = scmp.lt.u32.totalorder %s954_s26, %s1010_s2 }
 0x101   : > { %p649_p2 = scmp.lt.u32.totalorder %s647_s21, %s643_s8  ;;  %p651_p10 = scmp.lt.u32.totalorder %s643_s8, %s954_s26 }
 0x102   : > { %p645_p5 = pnand %p644_p1, %p1034_p11 }
 0x103   : > { %p650_p9 = por %p649_p2, %p648_p12 }
 0x104   : > { %p646_p6 = pneg %p645_p5 }
 0x105   : > { %p652_p13 = por %p651_p10, %p650_p9 }
 0x107   : > { %p653_p0 = pnand %p652_p13, %p646_p6 }
 0x109   : > { %656 = shalt.err (!%p653_p0)
}
 0x10a   : > { %468 = dma.vmem_to_hbm [thread:$0]  (%p1034_p11), %s956_s17, 64, %s954_s26, %s317_s13  }
 0x10b PF: > { %p485_p4 = scmp.ge.s32.totalorder %s731_s16, 2  ;;  %s346_s20 = sand.u32 1, %s703_s9  }
 0x10c   : > { %p1035_p3 = scmp.ne.s32.totalorder %s1023_s24, 0  ;;  %s347_s22 = scalar_lea.sflag [#allocation4], %s346_s20 }
 0x10e   : > { %p479_p7 = pnand %p485_p4, %p1035_p3 }
 0x110   : > { %698 = dma.done.wait (!%p479_p7), %s347_s22, 64  }
 0x111   : > { %700 = vsyncadd (!%p479_p7), %s347_s22, 4294967232  ;;  %s19_s16 = sadd.s32 1, %s731_s16   ;;  %s1036_s23 = sld [smem:[#allocation11_spill]] }
 0x112   : > { %p16_p8 = scmp.ge.s32.totalorder %s19_s16, 6   ;;  %s1037_s9 = smov %s707_s10 }
 0x113   : > { %s1038_s10 = smov %s711_s11  ;;  %s1039_s11 = smov %s893_s30 }
 0x114   : > { %s1040_s12 = smov %s723_s14  ;;  %s1041_s13 = smov %s727_s15 }
 0x115   : > { %s1043_s15 = smov %s1049_s3  ;;  %18 = sbr.rel (!%p16_p8) target bundleno = 10 (0xa), region = 85 }
 0x117   : > { %s1042_s14 = smov %s1036_s23 }
 0x11c   :  { %352 = vsyncpa [#allocation3], 1 }
 0x11d   :  { %354 = vsyncpa [#allocation3 + $0x1], 1 }
 0x11e   :  { %355 = vsyncpa [#allocation6], 1 }
 0x11f   :  { %356 = vsyncpa [#allocation4], 1 }
 0x120   :  { %358 = vsyncpa [#allocation4 + $0x1], 1 }

</bundles_post_ra>
